<compile_context>
chip_gen: v7x
topology: tpu7x:2x2x1
jax: 0.10.0
libtpu: 0.0.40
codegen_flags: <defaults>
</compile_context>

<pallas_src>
import functools
import math

import jax
import jax.numpy as jnp
from jax import lax
from jax.experimental import pallas as pl
from jax.experimental.pallas import tpu as pltpu

NEG_INF = -1e30  # used only by the pure-JAX reference


def _cq_attention_kernel(c_ref, q_ref, cmask_ref, qmask_ref, w_ref, o_ref, *,
                         mxu_dtype):
    """One (batch, Lc-row-block) grid step.

    c_ref:     (1, Lc,  D)    context, input dtype
    q_ref:     (1, Lq,  D)    query (Lq lane-padded), input dtype
    cmask_ref: (1, 1,  Lc)    float {0,1}, lane-dense
    qmask_ref: (1, 1,  Lq)    float {0,1}, lane-dense
    w_ref:     (3,  D)        rows = [w_C, w_Q, w_CQ], f32
    o_ref:     (1, tLc, 4D)   output row block
    """
    _, Lc, D = c_ref.shape
    _, Lq, _ = q_ref.shape
    tLc = o_ref.shape[1]
    f32 = jnp.float32
    mdt = mxu_dtype
    dims_t = (((1,), (1,)), ((), ()))          # contract last dims (A @ B^T)

    cmask = cmask_ref[0]                       # (1, Lc) {0,1}
    qmask = qmask_ref[0]                       # (1, Lq) {0,1}
    w1 = w_ref[0:1, :].astype(mdt)             # (1, D)
    w2 = w_ref[1:2, :].astype(mdt)             # (1, D)
    w3 = w_ref[2:3, :].astype(mdt)             # (1, D)

    C_in = c_ref[0]                            # (Lc, D) input dtype
    Cm = C_in.astype(mdt)                      # MXU operand dtype
    Qm = q_ref[0].astype(mdt)                  # (Lq, D)
    Cw3 = Cm * w3                              # (Lc, D)

    # ---- Pass 1: softmax over the C axis, in (Lq, Lc) orientation so cmask is
    # applied lane-dense.  St[j, i] = Q_j.w2 + C_i.w1 + (C_i*w3).Q_j
    Cw1_row = lax.dot_general(w1, Cm, dims_t,
                              preferred_element_type=f32)            # (1, Lc)
    Qw2_col = lax.dot_general(Qm, w2, dims_t,
                              preferred_element_type=f32)            # (Lq, 1)
    St = lax.dot_general(Qm, Cw3, dims_t,
                         preferred_element_type=f32)                 # (Lq, Lc)
    St = St + Qw2_col + Cw1_row
    # Multiplicative mask after exp == mask_logits(-1e30) for {0,1} masks with
    # >=1 valid context position (the unmasked row max upper-bounds the masked
    # max; softmax is shift invariant).  All-masked rows would give NaN here
    # (the torch reference gives a uniform row) -- not a case QANet produces.
    e2 = jnp.exp(St - jnp.max(St, axis=1, keepdims=True)) * cmask    # (Lq, Lc)
    # Exact reciprocal: this error reaches C*B through two matmuls, and the
    # divide is only (Lq, 1)-sized.
    S2t = e2 * (1.0 / jnp.sum(e2, axis=1, keepdims=True))            # (Lq, Lc)
    S2tC = jnp.dot(S2t.astype(mdt), Cm,
                   preferred_element_type=f32)                       # (Lq, D)

    # ---- Pass 2: this step's Lc row block only.
    if tLc == Lc:
        Ct, Ctm, Ctw3 = C_in, Cm, Cw3
    else:
        row0 = pl.multiple_of(pl.program_id(1) * tLc, 8)
        Ct = c_ref[0, pl.ds(row0, tLc), :]                           # (tLc, D)
        Ctm = Ct.astype(mdt)
        Ctw3 = Ctm * w3

    Cw1_col = lax.dot_general(Ctm, w1, dims_t,
                              preferred_element_type=f32)            # (tLc, 1)
    Qw2_row = lax.dot_general(w2, Qm, dims_t,
                              preferred_element_type=f32)            # (1, Lq)
    S = lax.dot_general(Ctw3, Qm, dims_t,
                        preferred_element_type=f32)                  # (tLc, Lq)
    S = S + Cw1_col + Qw2_row
    e1 = jnp.exp(S - jnp.max(S, axis=1, keepdims=True)) * qmask      # (tLc, Lq)
    S1 = e1 * pl.reciprocal(jnp.sum(e1, axis=1, keepdims=True), approx=True)

    # Fused A / B matmuls: shared LHS S1 and shared Lq contraction, so stream
    # S1 through the MXU once against the concatenated RHS [Q | S2^T C].
    R = jnp.concatenate([Qm, S2tC.astype(mdt)], axis=1)              # (Lq, 2D)
    AB = jnp.dot(S1.astype(mdt), R, preferred_element_type=f32)      # (tLc, 2D)
    A = AB[:, :D]
    Bm = AB[:, D:]

    Cf = Ct.astype(f32)      # no-op for f32 inputs; one per-tile cast otherwise
    odt = o_ref.dtype
    o_ref[0, :, 0:D] = Ct.astype(odt)
    o_ref[0, :, D:2 * D] = A.astype(odt)
    o_ref[0, :, 2 * D:3 * D] = (Cf * A).astype(odt)
    o_ref[0, :, 3 * D:4 * D] = (Cf * Bm).astype(odt)


def cq_attention(C, Q, cmask, qmask, w, *, lc_blocks=1, mxu_dtype=None):
    """CQAttention forward.

    C: (B, Lc, D), Q: (B, Lq, D), cmask: (B, Lc), qmask: (B, Lq), w: (3*D,).
    Returns (B, Lc, 4*D) = [C, A, C*A, C*B].

    lc_blocks: number of Lc row blocks (second, parallel grid axis).  Use >1
      on v7x when B is small so both TensorCores have work; the small (Lq, Lc)
      column-softmax pass is recomputed per block (cheap since Lq << Lc).
    mxu_dtype: dtype of the MXU operands (accumulation is always f32 via
      preferred_element_type).  Default: bfloat16 for f32 inputs (the
      bf16-native MXU path), else the input dtype.  Pass jnp.float32 for
      full-precision (multi-pass) matmuls.
    """
    B, Lc, D = C.shape
    _, Lq, _ = Q.shape

    if mxu_dtype is None:
        mxu_dtype = jnp.bfloat16 if C.dtype == jnp.float32 else C.dtype
    mxu_dtype = jnp.dtype(mxu_dtype)

    # Lane-align Lq (pad to a multiple of 128): padded columns carry qmask = 0
    # so they contribute exactly 0 to A and B.
    Lqp = ((Lq + 127) // 128) * 128
    cmask_f = cmask.astype(jnp.float32).reshape(B, 1, Lc)      # lane-dense
    qmask_f = qmask.astype(jnp.float32).reshape(B, 1, Lq)      # lane-dense
    if Lqp != Lq:
        Qp = jnp.pad(Q, ((0, 0), (0, Lqp - Lq), (0, 0)))
        qmask_f = jnp.pad(qmask_f, ((0, 0), (0, 0), (0, Lqp - Lq)))
    else:
        Qp = Q
    w2d = w.reshape(3, D).astype(jnp.float32)                  # rows [w1,w2,w3]

    # Lc row tiling only when it divides into sublane-aligned blocks.
    lc_blocks = max(int(lc_blocks), 1)
    if Lc % lc_blocks != 0 or (lc_blocks > 1 and (Lc // lc_blocks) % 8 != 0):
        lc_blocks = 1
    tLc = Lc // lc_blocks

    # VMEM budget: double-buffered I/O blocks + a generous estimate of the f32
    # intermediates, clamped to min(56 MiB, 70% of physical VMEM) so it is
    # safe on v7x (64 MiB/TC) as well as v5e/v6e (128 MiB).  Advisory only.
    isz = jnp.dtype(C.dtype).itemsize
    msz = mxu_dtype.itemsize
    io_bytes = ((Lc + Lqp) * D * isz
                + tLc * 4 * D * isz
                + 8 * (pl.cdiv(Lc, 128) + pl.cdiv(Lqp, 128)) * 128 * 4
                + 8 * 128 * 4)
    tmp_bytes = ((4 * Lqp * Lc + 4 * tLc * Lqp) * 4
                 + (Lqp * D + 3 * tLc * D + tLc * 2 * D) * 4
                 + 2 * (Lc + Lqp) * D * msz)
    try:
        vmem_cap = int(getattr(pltpu.get_tpu_info(), "vmem_capacity_bytes",
                               64 * 1024 * 1024))
    except Exception:
        vmem_cap = 64 * 1024 * 1024
    vmem_limit = int(min(max(2 * io_bytes + tmp_bytes + (4 << 20), 16 << 20),
                         min(56 << 20, int(0.70 * vmem_cap))))

    # Advisory cost estimate for XLA's scheduler around the custom call.
    macs = B * ((2 * lc_blocks + 3) * Lc * Lqp * D
                + 2 * (Lc + Lqp) * D * lc_blocks)
    cost = pl.CostEstimate(
        flops=int(2 * macs),
        transcendentals=int(B * (lc_blocks + 1) * Lc * Lqp),
        bytes_accessed=int(B * ((Lc + Lqp) * D * isz + Lc * 4 * D * isz
                                + (Lc + Lqp) * 4)))

    kernel = functools.partial(_cq_attention_kernel, mxu_dtype=mxu_dtype)
    out = pl.pallas_call(
        kernel,
        out_shape=jax.ShapeDtypeStruct((B, Lc, 4 * D), C.dtype),
        grid_spec=pltpu.PrefetchScalarGridSpec(
            num_scalar_prefetch=0,
            grid=(B, lc_blocks),
            in_specs=[
                pl.BlockSpec((1, Lc, D), lambda b, i: (b, 0, 0)),
                pl.BlockSpec((1, Lqp, D), lambda b, i: (b, 0, 0)),
                pl.BlockSpec((1, 1, Lc), lambda b, i: (b, 0, 0)),
                pl.BlockSpec((1, 1, Lqp), lambda b, i: (b, 0, 0)),
                pl.BlockSpec((3, D), lambda b, i: (0, 0)),
            ],
            out_specs=pl.BlockSpec((1, tLc, 4 * D), lambda b, i: (b, i, 0)),
        ),
        compiler_params=pltpu.CompilerParams(
            dimension_semantics=("parallel", "parallel"),
            vmem_limit_bytes=vmem_limit),
        cost_estimate=cost,
    )(C, Qp, cmask_f, qmask_f, w2d)

    # TODO(synk): F.dropout is identity at inference (training=False); no RNG
    # dropout is applied here.
    return out


def _reference(C, Q, cmask, qmask, w):
    """Pure-JAX transcription of the PyTorch forward (eval mode)."""
    B, Lc, D = C.shape
    Lq = Q.shape[1]
    cm = cmask[:, :, None].astype(jnp.float32)          # (B, Lc, 1)
    qm = qmask[:, None, :].astype(jnp.float32)          # (B, 1, Lq)
    Ct = jnp.broadcast_to(C[:, :, None, :], (B, Lc, Lq, D))
    Qt = jnp.broadcast_to(Q[:, None, :, :], (B, Lc, Lq, D))
    Scat = jnp.concatenate([Ct, Qt, Ct * Qt], axis=3)   # (B, Lc, Lq, 3D)
    S = Scat @ w                                        # (B, Lc, Lq)
    S1 = jax.nn.softmax(S * qm + (1.0 - qm) * NEG_INF, axis=2)
    S2 = jax.nn.softmax(S * cm + (1.0 - cm) * NEG_INF, axis=1)
    A = jnp.einsum("bij,bjd->bid", S1, Q)
    Bm = jnp.einsum("bik,bkd->bid",
                    jnp.einsum("bij,bkj->bik", S1, S2), C)
    return jnp.concatenate([C, A, C * A, C * Bm], axis=2)


if __name__ == "__main__":
    B, Lc, Lq, D = 2, 16, 8, 32
    key = jax.random.PRNGKey(0)
    kc, kq, kw = jax.random.split(key, 3)

    C = jax.random.normal(kc, (B, Lc, D), dtype=jnp.float32)
    Q = jax.random.normal(kq, (B, Lq, D), dtype=jnp.float32)

    # Valid-length style masks (1 = keep, 0 = masked), deterministic.
    cmask = (jnp.arange(Lc)[None, :] < jnp.array([[Lc], [Lc - 3]])).astype(jnp.float32)
    qmask = (jnp.arange(Lq)[None, :] < jnp.array([[Lq], [Lq - 2]])).astype(jnp.float32)

    # nn.init.uniform_(w, -sqrt(1/d_model), sqrt(1/d_model)), deterministic.
    lim = math.sqrt(1.0 / D)
    w = jax.random.uniform(kw, (3 * D,), minval=-lim, maxval=lim, dtype=jnp.float32)

    ref = _reference(C, Q, cmask, qmask, w)

    # 1) Full-precision MXU parity check; also exercises the parallel Lc
    #    row-block grid axis (grid = (B, 2)).
    out = cq_attention(C, Q, cmask, qmask, w, lc_blocks=2,
                       mxu_dtype=jnp.float32)
    out = jax.block_until_ready(out)
    assert out.shape == (B, Lc, 4 * D)
    max_err = float(jnp.abs(out - ref).max())
    assert jnp.allclose(out, ref, atol=2e-2, rtol=2e-2), max_err

    # 2) Default fast path: bf16 MXU operands with f32 accumulation (the
    #    bf16-native matmul path for f32 models on v5e/v6e/v7x).
    out_fast = cq_attention(C, Q, cmask, qmask, w)
    out_fast = jax.block_until_ready(out_fast)
    max_err_fast = float(jnp.abs(out_fast - ref).max())
    assert jnp.allclose(out_fast, ref, atol=1e-1, rtol=1e-1), max_err_fast

    print("KERNEL_OK")
</pallas_src>

<mosaic_0001>
module attributes {stable_mosaic.version = 11 : i64} {
  func.func @_cq_attention_kernel(%arg0: i32, %arg1: i32, %arg2: memref<1x16x32xf32, #tpu.memory_space<vmem>>, %arg3: memref<1x128x32xf32, #tpu.memory_space<vmem>>, %arg4: memref<1x1x16xf32, #tpu.memory_space<vmem>>, %arg5: memref<1x1x128xf32, #tpu.memory_space<vmem>>, %arg6: memref<3x32xf32, #tpu.memory_space<vmem>>, %arg7: memref<1x8x128xf32, #tpu.memory_space<vmem>>) attributes {dimension_semantics = [#tpu.dimension_semantics<parallel>, #tpu.dimension_semantics<parallel>], iteration_bounds = array<i64: 2, 2>, scalar_prefetch = 0 : i64, scratch_operands = 0 : i64, tpu.core_type = #tpu.core_type<tc>, window_params = [{transform_indices = @transform_0, window_bounds = array<i64: 1, 16, 32>}, {transform_indices = @transform_1, window_bounds = array<i64: 1, 128, 32>}, {transform_indices = @transform_2, window_bounds = array<i64: 1, 1, 16>}, {transform_indices = @transform_3, window_bounds = array<i64: 1, 1, 128>}, {pipeline_mode = #tpu.pipeline_mode<synchronous>, transform_indices = @transform_4, window_bounds = array<i64: 3, 32>}, {transform_indices = @transform_5, window_bounds = array<i64: 1, 8, 128>}]} {
    %c0 = arith.constant 0 : index
    %c0_0 = arith.constant 0 : index
    %c0_1 = arith.constant 0 : index
    %0 = vector.load %arg4[%c0, %c0_0, %c0_1] : memref<1x1x16xf32, #tpu.memory_space<vmem>>, vector<1x1x16xf32>
    %1 = vector.shape_cast %0 : vector<1x1x16xf32> to vector<1x16xf32>
    %c0_2 = arith.constant 0 : index
    %c0_3 = arith.constant 0 : index
    %c0_4 = arith.constant 0 : index
    %2 = vector.load %arg5[%c0_2, %c0_3, %c0_4] : memref<1x1x128xf32, #tpu.memory_space<vmem>>, vector<1x1x128xf32>
    %3 = vector.shape_cast %2 : vector<1x1x128xf32> to vector<1x128xf32>
    %c0_5 = arith.constant 0 : index
    %c0_6 = arith.constant 0 : index
    %4 = vector.load %arg6[%c0_5, %c0_6] : memref<3x32xf32, #tpu.memory_space<vmem>>, vector<1x32xf32>
    %c1 = arith.constant 1 : index
    %c0_7 = arith.constant 0 : index
    %5 = vector.load %arg6[%c1, %c0_7] : memref<3x32xf32, #tpu.memory_space<vmem>>, vector<1x32xf32>
    %c2 = arith.constant 2 : index
    %c0_8 = arith.constant 0 : index
    %6 = vector.load %arg6[%c2, %c0_8] : memref<3x32xf32, #tpu.memory_space<vmem>>, vector<1x32xf32>
    %c0_9 = arith.constant 0 : index
    %c0_10 = arith.constant 0 : index
    %c0_11 = arith.constant 0 : index
    %7 = vector.load %arg2[%c0_9, %c0_10, %c0_11] : memref<1x16x32xf32, #tpu.memory_space<vmem>>, vector<1x16x32xf32>
    %8 = vector.shape_cast %7 : vector<1x16x32xf32> to vector<16x32xf32>
    %c0_12 = arith.constant 0 : index
    %c0_13 = arith.constant 0 : index
    %c0_14 = arith.constant 0 : index
    %9 = vector.load %arg3[%c0_12, %c0_13, %c0_14] : memref<1x128x32xf32, #tpu.memory_space<vmem>>, vector<1x128x32xf32>
    %10 = vector.shape_cast %9 : vector<1x128x32xf32> to vector<128x32xf32>
    %11 = vector.broadcast %6 : vector<1x32xf32> to vector<16x32xf32>
    %12 = arith.mulf %8, %11 : vector<16x32xf32>
    %cst = arith.constant dense<0.000000e+00> : vector<1x16xf32>
    %13 = tpu.matmul %4, %8, %cst {dimension_numbers = #tpu.dot_dimension_numbers<[1], [1], [0], [0], [0, 0, 1, 0], [], []>} : vector<1x32xf32>, vector<16x32xf32>, vector<1x16xf32> -> vector<1x16xf32>
    %cst_15 = arith.constant dense<0.000000e+00> : vector<128x1xf32>
    %14 = tpu.matmul %10, %5, %cst_15 {dimension_numbers = #tpu.dot_dimension_numbers<[1], [1], [0], [0], [0, 0, 1, 0], [], []>} : vector<128x32xf32>, vector<1x32xf32>, vector<128x1xf32> -> vector<128x1xf32>
    %cst_16 = arith.constant dense<0.000000e+00> : vector<128x16xf32>
    %15 = tpu.matmul %10, %12, %cst_16 {dimension_numbers = #tpu.dot_dimension_numbers<[1], [1], [0], [0], [0, 0, 1, 0], [], []>} : vector<128x32xf32>, vector<16x32xf32>, vector<128x16xf32> -> vector<128x16xf32>
    %16 = vector.broadcast %14 : vector<128x1xf32> to vector<128x16xf32>
    %17 = arith.addf %15, %16 : vector<128x16xf32>
    %18 = vector.broadcast %13 : vector<1x16xf32> to vector<128x16xf32>
    %19 = arith.addf %17, %18 : vector<128x16xf32>
    %cst_17 = arith.constant dense<0xFF800000> : vector<128xf32>
    %20 = vector.multi_reduction <maximumf>, %19, %cst_17 [1] : vector<128x16xf32> to vector<128xf32>
    %21 = vector.shape_cast %20 : vector<128xf32> to vector<128x1xf32>
    %22 = vector.broadcast %21 : vector<128x1xf32> to vector<128x16xf32>
    %23 = arith.subf %19, %22 : vector<128x16xf32>
    %24 = math.exp %23 : vector<128x16xf32>
    %25 = vector.broadcast %1 : vector<1x16xf32> to vector<128x16xf32>
    %26 = arith.mulf %24, %25 : vector<128x16xf32>
    %cst_18 = arith.constant dense<0.000000e+00> : vector<128xf32>
    %27 = vector.multi_reduction <add>, %26, %cst_18 [1] : vector<128x16xf32> to vector<128xf32>
    %28 = vector.shape_cast %27 : vector<128xf32> to vector<128x1xf32>
    %cst_19 = arith.constant 1.000000e+00 : f32
    %29 = vector.broadcast %cst_19 : f32 to vector<128x1xf32>
    %30 = arith.divf %29, %28 : vector<128x1xf32>
    %31 = vector.broadcast %30 : vector<128x1xf32> to vector<128x16xf32>
    %32 = arith.mulf %26, %31 : vector<128x16xf32>
    %cst_20 = arith.constant dense<0.000000e+00> : vector<128x32xf32>
    %33 = tpu.matmul %32, %8, %cst_20 {dimension_numbers = #tpu.dot_dimension_numbers<[1], [0], [0], [1], [0, 0, 1, 1], [], []>} : vector<128x16xf32>, vector<16x32xf32>, vector<128x32xf32> -> vector<128x32xf32>
    %c8_i32 = arith.constant 8 : i32
    %34 = arith.muli %arg1, %c8_i32 : i32
    %35 = tpu.assume_multiple %34, 8 : i32
    %c0_21 = arith.constant 0 : index
    %36 = arith.index_cast %35 : i32 to index
    %c0_22 = arith.constant 0 : index
    %37 = vector.load %arg2[%c0_21, %36, %c0_22] : memref<1x16x32xf32, #tpu.memory_space<vmem>>, vector<1x8x32xf32>
    %38 = vector.shape_cast %37 : vector<1x8x32xf32> to vector<8x32xf32>
    %39 = vector.broadcast %6 : vector<1x32xf32> to vector<8x32xf32>
    %40 = arith.mulf %38, %39 : vector<8x32xf32>
    %cst_23 = arith.constant dense<0.000000e+00> : vector<8x1xf32>
    %41 = tpu.matmul %38, %4, %cst_23 {dimension_numbers = #tpu.dot_dimension_numbers<[1], [1], [0], [0], [0, 0, 1, 0], [], []>} : vector<8x32xf32>, vector<1x32xf32>, vector<8x1xf32> -> vector<8x1xf32>
    %cst_24 = arith.constant dense<0.000000e+00> : vector<1x128xf32>
    %42 = tpu.matmul %5, %10, %cst_24 {dimension_numbers = #tpu.dot_dimension_numbers<[1], [1], [0], [0], [0, 0, 1, 0], [], []>} : vector<1x32xf32>, vector<128x32xf32>, vector<1x128xf32> -> vector<1x128xf32>
    %cst_25 = arith.constant dense<0.000000e+00> : vector<8x128xf32>
    %43 = tpu.matmul %40, %10, %cst_25 {dimension_numbers = #tpu.dot_dimension_numbers<[1], [1], [0], [0], [0, 0, 1, 0], [], []>} : vector<8x32xf32>, vector<128x32xf32>, vector<8x128xf32> -> vector<8x128xf32>
    %44 = vector.broadcast %41 : vector<8x1xf32> to vector<8x128xf32>
    %45 = arith.addf %43, %44 : vector<8x128xf32>
    %46 = vector.broadcast %42 : vector<1x128xf32> to vector<8x128xf32>
    %47 = arith.addf %45, %46 : vector<8x128xf32>
    %cst_26 = arith.constant dense<0xFF800000> : vector<8xf32>
    %48 = vector.multi_reduction <maximumf>, %47, %cst_26 [1] : vector<8x128xf32> to vector<8xf32>
    %49 = vector.shape_cast %48 : vector<8xf32> to vector<8x1xf32>
    %50 = vector.broadcast %49 : vector<8x1xf32> to vector<8x128xf32>
    %51 = arith.subf %47, %50 : vector<8x128xf32>
    %52 = math.exp %51 : vector<8x128xf32>
    %53 = vector.broadcast %3 : vector<1x128xf32> to vector<8x128xf32>
    %54 = arith.mulf %52, %53 : vector<8x128xf32>
    %cst_27 = arith.constant dense<0.000000e+00> : vector<8xf32>
    %55 = vector.multi_reduction <add>, %54, %cst_27 [1] : vector<8x128xf32> to vector<8xf32>
    %56 = vector.shape_cast %55 : vector<8xf32> to vector<8x1xf32>
    %57 = tpu.reciprocal %56 {approx = true} : vector<8x1xf32> -> vector<8x1xf32>
    %58 = vector.broadcast %57 : vector<8x1xf32> to vector<8x128xf32>
    %59 = arith.mulf %54, %58 : vector<8x128xf32>
    %60 = tpu.concatenate %10, %33 in 1 : vector<128x32xf32>, vector<128x32xf32> -> vector<128x64xf32>
    %cst_28 = arith.constant dense<0.000000e+00> : vector<8x64xf32>
    %61 = tpu.matmul %59, %60, %cst_28 {dimension_numbers = #tpu.dot_dimension_numbers<[1], [0], [0], [1], [0, 0, 1, 1], [], []>} : vector<8x128xf32>, vector<128x64xf32>, vector<8x64xf32> -> vector<8x64xf32>
    %62 = vector.extract_strided_slice %61 {offsets = [0, 0], sizes = [8, 32], strides = [1, 1]} : vector<8x64xf32> to vector<8x32xf32>
    %63 = vector.extract_strided_slice %61 {offsets = [0, 32], sizes = [8, 32], strides = [1, 1]} : vector<8x64xf32> to vector<8x32xf32>
    %c0_29 = arith.constant 0 : index
    %c0_30 = arith.constant 0 : index
    %c0_31 = arith.constant 0 : index
    %64 = vector.load %arg7[%c0_29, %c0_30, %c0_31] : memref<1x8x128xf32, #tpu.memory_space<vmem>>, vector<1x8x32xf32>
    %65 = vector.shape_cast %64 : vector<1x8x32xf32> to vector<8x32xf32>
    %66 = vector.shape_cast %38 : vector<8x32xf32> to vector<1x8x32xf32>
    tpu.vector_store %arg7[%c0_29, %c0_30, %c0_31], %66 {strides = array<i32>} : memref<1x8x128xf32, #tpu.memory_space<vmem>>, vector<1x8x32xf32>,
    %c0_32 = arith.constant 0 : index
    %c0_33 = arith.constant 0 : index
    %c32 = arith.constant 32 : index
    %67 = vector.load %arg7[%c0_32, %c0_33, %c32] : memref<1x8x128xf32, #tpu.memory_space<vmem>>, vector<1x8x32xf32>
    %68 = vector.shape_cast %67 : vector<1x8x32xf32> to vector<8x32xf32>
    %69 = vector.shape_cast %62 : vector<8x32xf32> to vector<1x8x32xf32>
    tpu.vector_store %arg7[%c0_32, %c0_33, %c32], %69 {strides = array<i32>} : memref<1x8x128xf32, #tpu.memory_space<vmem>>, vector<1x8x32xf32>,
    %70 = arith.mulf %38, %62 : vector<8x32xf32>
    %c0_34 = arith.constant 0 : index
    %c0_35 = arith.constant 0 : index
    %c64 = arith.constant 64 : index
    %71 = vector.load %arg7[%c0_34, %c0_35, %c64] : memref<1x8x128xf32, #tpu.memory_space<vmem>>, vector<1x8x32xf32>
    %72 = vector.shape_cast %71 : vector<1x8x32xf32> to vector<8x32xf32>
    %73 = vector.shape_cast %70 : vector<8x32xf32> to vector<1x8x32xf32>
    tpu.vector_store %arg7[%c0_34, %c0_35, %c64], %73 {strides = array<i32>} : memref<1x8x128xf32, #tpu.memory_space<vmem>>, vector<1x8x32xf32>,
    %74 = arith.mulf %38, %63 : vector<8x32xf32>
    %c0_36 = arith.constant 0 : index
    %c0_37 = arith.constant 0 : index
    %c96 = arith.constant 96 : index
    %75 = vector.load %arg7[%c0_36, %c0_37, %c96] : memref<1x8x128xf32, #tpu.memory_space<vmem>>, vector<1x8x32xf32>
    %76 = vector.shape_cast %75 : vector<1x8x32xf32> to vector<8x32xf32>
    %77 = vector.shape_cast %74 : vector<8x32xf32> to vector<1x8x32xf32>
    tpu.vector_store %arg7[%c0_36, %c0_37, %c96], %77 {strides = array<i32>} : memref<1x8x128xf32, #tpu.memory_space<vmem>>, vector<1x8x32xf32>,
    return
  }
  func.func @transform_0(%arg0: i32, %arg1: i32) -> (i32, i32, i32) {
    %c0_i32 = arith.constant 0 : i32
    %c0_i32_0 = arith.constant 0 : i32
    %c0_i32_1 = arith.constant 0 : i32
    return %arg0, %c0_i32, %c0_i32_0 : i32, i32, i32
  }
  func.func @transform_1(%arg0: i32, %arg1: i32) -> (i32, i32, i32) {
    %c0_i32 = arith.constant 0 : i32
    %c0_i32_0 = arith.constant 0 : i32
    %c0_i32_1 = arith.constant 0 : i32
    return %arg0, %c0_i32, %c0_i32_0 : i32, i32, i32
  }
  func.func @transform_2(%arg0: i32, %arg1: i32) -> (i32, i32, i32) {
    %c0_i32 = arith.constant 0 : i32
    %c0_i32_0 = arith.constant 0 : i32
    %c0_i32_1 = arith.constant 0 : i32
    return %arg0, %c0_i32, %c0_i32_0 : i32, i32, i32
  }
  func.func @transform_3(%arg0: i32, %arg1: i32) -> (i32, i32, i32) {
    %c0_i32 = arith.constant 0 : i32
    %c0_i32_0 = arith.constant 0 : i32
    %c0_i32_1 = arith.constant 0 : i32
    return %arg0, %c0_i32, %c0_i32_0 : i32, i32, i32
  }
  func.func @transform_4(%arg0: i32, %arg1: i32) -> (i32, i32) {
    %c0_i32 = arith.constant 0 : i32
    %c0_i32_0 = arith.constant 0 : i32
    %c0_i32_1 = arith.constant 0 : i32
    return %c0_i32, %c0_i32_0 : i32, i32
  }
  func.func @transform_5(%arg0: i32, %arg1: i32) -> (i32, i32, i32) {
    %c0_i32 = arith.constant 0 : i32
    %c0_i32_0 = arith.constant 0 : i32
    return %arg0, %arg1, %c0_i32 : i32, i32, i32
  }
}

</mosaic_0001>

<bundles_post_ra>
// kernel: tpu_custom_call.1
= control target key start
LH: loop header
LB: loop body
LE: loop exit
PB: predicated region body
PF: predicated region fallthrough
CT: control target
= control target key end

     0   :  { %10 = vsyncpa [#allocation3], 0  ;;  %s3038_s0 = inlined_call_operand.vmem [shape: f32[2,16,32], index: 0, kind: input, shape index: {}]   ;;  %s3039_s1 = inlined_call_operand.vmem [shape: f32[2,128,32], index: 1, kind: input, shape index: {}]   ;;  %s3040_s2 = inlined_call_operand.vmem [shape: f32[2,1,16], index: 2, kind: input, shape index: {}]   ;;  %s3041_s3 = inlined_call_operand.vmem [shape: f32[2,1,128], index: 3, kind: input, shape index: {}]   ;;  %s3042_s4 = inlined_call_operand.vmem [shape: f32[3,32], index: 4, kind: input, shape index: {}]   ;;  %s3043_s5 = inlined_call_operand.hbm [shape: f32[2,16,128], index: 5, kind: output, shape index: {}]  }
   0x1   :  { %12 = vsyncpa [#allocation3 + $0x1], 0  ;;  %s2333_s18 = smov 0   ;;  %s2335_s19 = smov 0  }
   0x2   :  { %s2337_s20 = smov 0   ;;  %s2339_s21 = smov 0  }
   0x3   :  { %s2341_s22 = smov 0   ;;  %s2343_s23 = smov 0  }
   0x4   :  { %s2345_s24 = smov 0   ;;  %s2347_s25 = smov 0  }
   0x5 LB: > { %s1562_s26 = sadd.s32 4294967295, %s2294_s25   ;;  %s1563_s27 = sadd.s32 4294967294, %s2294_s25   ;;  %s2294_s25 = sphi %s2347_s25, %s18_s25   ;;  %s2290_s24 = sphi %s2345_s24, %s3054_s24   ;;  %s2286_s23 = sphi %s2343_s23, %s3053_s23   ;;  %s2282_s22 = sphi %s2341_s22, %s3052_s22   ;;  %s2278_s21 = sphi %s2339_s21, %s3051_s21   ;;  %s2274_s20 = sphi %s2337_s20, %s3050_s20   ;;  %s2270_s19 = sphi %s2335_s19, %s3049_s19   ;;  %s2266_s18 = sphi %s2333_s18, %s3048_s18  }
   0x6   : > { %s27_s28 = sadd.s32 1, %s2286_s23  ;;  %s30_s29 = sadd.s32 1, %s2290_s24 }
   0x7   : > { %p28_p0 = scmp.ge.s32.totalorder %s27_s28, 2  ;;  %p174_p1 = scmp.ne.s32.totalorder %s2274_s20, %s2270_s19 }
   0x8   : > { %p175_p2 = scmp.eq.s32.totalorder %s1562_s26, 3  ;;  %p180_p5 = scmp.ne.s32.totalorder %s2270_s19, %s2266_s18 }
   0x9   : > { %s3056_s28 = smov (%p28_p0, %s27_s28), 0  ;;  %s3058_s29 = smov (!%p28_p0, %s30_s29), %s2290_s24 }
   0xa   : > { %s160_s30 = ssub.s32 %s2286_s23, %s3056_s28  ;;  %p2384_p3 = por %p175_p2, %p174_p1 }
   0xb   : > { %p32_p4 = scmp.ge.s32.totalorder %s3058_s29, 2  ;;  %p181_p6 = scmp.eq.s32.totalorder %s1563_s27, 3 }
   0xc   : > { %p1566_p7 = scmp.ge.s32.totalorder %s2294_s25, 1  ;;  %p230_p9 = scmp.lt.s32.totalorder %s2294_s25, 5 }
   0xd   : > { %s3060_s29 = smov (%p32_p4, %s3058_s29), 0  ;;  %p2393_p8 = por %p181_p6, %p180_p5 }
   0xe   : > { %s159_s8 = ssub.s32 %s2290_s24, %s3060_s29  ;;  %s164_s9 = sadd.s32 1, %s2274_s20 }
   0xf   : > { %s161_s10 = sor.u32 %s160_s30, %s159_s8  ;;  %p231_p10 = pnand %p1566_p7, %p230_p9 }
  0x10   : > { %p162_p11 = scmp.eq.s32.totalorder %s161_s10, 0  ;;  %p269_p12 = scmp.lt.s32.totalorder (!%p231_p10), %s2282_s22, 1  ;;  %v394_v0 = vlaneseq (!%p231_p10)  ;;  %v2296_v1 = vmov (!%p231_p10), 0.0|0.0   ;;  %vm314_vm0 = vcmask (!%p231_p10), 261120   ;;  %vm2297_vm1 = vmmov (!%p231_p10), 0  }
  0x11   : > { %234 = sbr.rel (%p231_p10) target bundleno = 1627 (0x65b), region = 40  ;;  %1912 = vmatprep.subr.bf16.mxu0 (!%p231_p10), %v2296_v1  ;;  %v2298_v2 = vmov (!%p231_p10), 0.0   ;;  %v2414_v4 = vld [vmem:[%s3042_s4 + $0x1] sm:$0x1] (!%p231_p10)  ;;  %v2421_v5 = vld [vmem:[%s3042_s4 + $0x2] ss:$0 sm:$0xff] (!%p231_p10)  ;;  %vm2437_vm2 = vmpackc.low (!%p231_p10), %vm314_vm0, %vm314_vm0 }
  0x12   : > { %s2402_s11 = scalar_select %p162_p11, %s2274_s20, %s164_s9  }
  0x13   : > { %1748 = vmatprep.mubr.msk.f32.mxu0 (!%p231_p10), %vm2297_vm1, %v2298_v2  ;;  %v395_v3 = vshrl.u32 (!%p231_p10), %v394_v0, 7  ;;  %v2488_v29 = vld [vmem:[%s3042_s4] sm:$0x1] (!%p231_p10)  ;;  %vm681_vm3 = vcmask (!%p231_p10), 130048   ;;  %s1611_s27 = sshll.u32 (!%p231_p10), %s2278_s21, 3  ;;  %s2301_s17 = smov (!%p231_p10), 64  }
  0x14   : > { %vm1423_vm4 = vcmask (!%p231_p10), 523520   ;;  %vm1430_vm5 = vcmask (!%p231_p10), 785920   ;;  %vm1440_vm6 = vcmask (!%p231_p10), 1048320  }
  0x15   : > { %v2423_v6 = vsub.s32 (!%p231_p10), 0, %v395_v3 }
  0x17   : > { %v2448_v11 = vrot.slane (!%p231_p10), %v2414_v4, %v2423_v6 }
  0x18   : > { %s2407_s12 = scalar_select %p269_p12, %s2282_s22, 1 }
  0x1a   : > { %s1652_s15 = sshll.u32 %s2407_s12, 4  ;;  %s1653_s16 = sshll.u32 %s2407_s12, 7 }
  0x1b   : > { %s2428_s8 = scalar_lea.vmem %s3038_s0, %s1652_s15  ;;  %s2433_s13 = scalar_lea.vmem %s3039_s1, %s1653_s16 }
  0x1c   : > { %v290_v8 = vld [vmem:[%s2428_s8] sm:$0xff]  ;;  %v291_v9 = vld [vmem:[%s2428_s8 + $0x8] sm:$0xff]  ;;  %v294_v16 = vld [vmem:[%s2433_s13 + $0x10] sm:$0xff]  ;;  %s281_s26 = scalar_lea.vmem %s3040_s2, %s2407_s12  ;;  %s1090_s30 = scalar_lea.vmem %s2428_s8, %s1611_s27 }
  0x1d   : > { %v2444_v10 = vld [vmem:[%s2433_s13] sm:$0xff]  ;;  %v312_v12 = vmul.f32 %v2421_v5, %v290_v8  ;;  %v313_v13 = vmul.f32 %v2421_v5, %v291_v9  ;;  %v1913_v14 = vpack.c.bf16 %v291_v9, %v290_v8  ;;  %v2455_v15 = vld [vmem:[%s2433_s13 + $0x8] sm:$0xff]  ;;  %v2459_v17 = vld [vmem:[%s2433_s13 + $0x18] sm:$0xff]  ;;  %v400_v21 = vmul.f32 %v2448_v11, %v294_v16  ;;  %s2299_s8 = smov 32   ;;  %s284_s14 = scalar_lea.vmem %s3041_s3, %s2407_s12 }
  0x1e   : > { %1755 = vmatprep.mubr.msk.f32.mxu1 %vm314_vm0, %v2444_v10  ;;  %v398_v18 = vmul.f32 %v2448_v11, %v2444_v10  ;;  %v399_v19 = vmul.f32 %v2448_v11, %v2455_v15  ;;  %v401_v22 = vmul.f32 %v2448_v11, %v2459_v17  ;;  %v2474_v24 = vld [vmem:[%s2433_s13 + $0x20] sm:$0xff]  ;;  %v2480_v26 = vld [vmem:[%s2433_s13 + $0x28] sm:$0xff]  ;;  %v2495_v32 = vld [vmem:[%s2433_s13 + $0x30] sm:$0xff]  ;;  %v2507_v36 = vpack.c.bf16 %v2455_v15, %v2444_v10  ;;  %s266_s12 = sand.u32 1, %s2270_s19   ;;  %s2300_s16 = smov 96  }
  0x1f   : > { %v1916_v20 = vpack.c.bf16 %v313_v13, %v312_v12  ;;  %1915 = vmatpush3.bf16.xpose.msk.msra.mxu0 %vm2437_vm2, %v1913_v14  ;;  %v420_v25 = vsel %vm314_vm0, %v400_v21, 0.0  ;;  %v402_v28 = vmul.f32 %v2448_v11, %v2474_v24  ;;  %v403_v31 = vmul.f32 %v2448_v11, %v2480_v26  ;;  %v2500_v33 = vld [vmem:[%s2433_s13 + $0x38] sm:$0xff]  ;;  %v2516_v39 = vld [vmem:[%s2433_s13 + $0x40] sm:$0xff]  ;;  %v2520_v40 = vld [vmem:[%s2433_s13 + $0x48] sm:$0xff] }
  0x20   : > { %v414_v23 = vsel %vm314_vm0, %v398_v18, 0.0  ;;  %1923 = vmatprep.subr.bf16.mxu0 %v1913_v14  ;;  %421 = vadd.xlane.f32.xlu1 %v420_v25  ;;  %v417_v27 = vsel %vm314_vm0, %v399_v19, 0.0  ;;  %v423_v30 = vsel %vm314_vm0, %v401_v22, 0.0  ;;  %v404_v35 = vmul.f32 %v2448_v11, %v2495_v32  ;;  %v2535_v45 = vld [vmem:[%s2433_s13 + $0x50] sm:$0xff]  ;;  %v2540_v46 = vld [vmem:[%s2433_s13 + $0x58] sm:$0xff]  ;;  %v2554_v52 = vld [vmem:[%s2433_s13 + $0x60] sm:$0xff] }
  0x21   : > { %1918 = vmatprep.subr.msk.bf16.mxu1 %vm2437_vm2, %v1916_v20  ;;  %415 = vadd.xlane.f32.xlu0 %v414_v23  ;;  %v426_v34 = vsel %vm314_vm0, %v402_v28, 0.0  ;;  %v429_v37 = vsel %vm314_vm0, %v403_v31, 0.0  ;;  %v405_v38 = vmul.f32 %v2448_v11, %v2500_v33  ;;  %v406_v42 = vmul.f32 %v2448_v11, %v2516_v39  ;;  %v2559_v53 = vld [vmem:[%s2433_s13 + $0x68] sm:$0xff]  ;;  %v2574_v58 = vld [vmem:[%s2433_s13 + $0x70] sm:$0xff]  ;;  %v2579_v59 = vld [vmem:[%s2433_s13 + $0x78] sm:$0xff] }
  0x22   : > { %1921 = vmatpush3.bf16.xpose.msk.msra.mxu1 %vm2437_vm2, %v1916_v20  ;;  %v432_v41 = vsel %vm314_vm0, %v404_v35, 0.0  ;;  %v407_v44 = vmul.f32 %v2448_v11, %v2520_v40  ;;  %v408_v48 = vmul.f32 %v2448_v11, %v2535_v45  ;;  %v2546_v49 = vpack.c.bf16 %v2459_v17, %v294_v16 }
  0x23   : > { %1926 = vmatprep.subr.bf16.mxu1 %v2296_v1  ;;  %v435_v43 = vsel %vm314_vm0, %v405_v38, 0.0  ;;  %v438_v47 = vsel %vm314_vm0, %v406_v42, 0.0  ;;  %v409_v51 = vmul.f32 %v2448_v11, %v2540_v46  ;;  %v410_v55 = vmul.f32 %v2448_v11, %v2554_v52 }
  0x24   : > { %424 = vadd.xlane.f32.xlu1 %v423_v30  ;;  %v441_v50 = vsel %vm314_vm0, %v407_v44, 0.0  ;;  %v444_v54 = vsel %vm314_vm0, %v408_v48, 0.0  ;;  %v411_v57 = vmul.f32 %v2448_v11, %v2559_v53  ;;  %v412_v61 = vmul.f32 %v2448_v11, %v2574_v58 }
  0x25   : > { %418 = vadd.xlane.f32.xlu0 %v417_v27  ;;  %v447_v56 = vsel %vm314_vm0, %v409_v51, 0.0  ;;  %v450_v60 = vsel %vm314_vm0, %v410_v55, 0.0  ;;  %v2586_v62 = vpack.c.bf16 %v2480_v26, %v2474_v24  ;;  %v413_v0 = vmul.f32 %v2448_v11, %v2579_v59 }
  0x26   : > { %1749 = vmatmul.mubr.msk.f32.vlgmr.msra.gmra.mrb[0].mxu0 %vm314_vm0, %v2488_v29  ;;  %v453_v63 = vsel %vm314_vm0, %v411_v57, 0.0  ;;  %v456_v3 = vsel %vm314_vm0, %v412_v61, 0.0  ;;  %v2607_v9 = vpack.c.bf16 %v2500_v33, %v2495_v32  ;;  %v2623_v11 = vpack.c.bf16 %v2520_v40, %v2516_v39 }
  0x27   : > { %1925 = vmatpush3.bf16.msra.mxu0 %v1913_v14  ;;  %v459_v8 = vsel %vm314_vm0, %v413_v0, 0.0  ;;  %v2631_v12 = vpack.c.bf16 %v2540_v46, %v2535_v45  ;;  %v2639_v13 = vpack.c.bf16 %v2559_v53, %v2554_v52  ;;  %v2647_v14 = vpack.c.bf16 %v2579_v59, %v2574_v58 }
  0x28   : > { %1958 = vmatprep.subr.bf16.mxu0 %v2296_v1  ;;  %430 = vadd.xlane.f32.xlu1 %v429_v37 }
  0x29   : > { %1756 = vmatmul.mubr.msk.f32.vlgmr.msra.gmra.mrb[0].mxu1 %vm314_vm0, %v2455_v15  ;;  %427 = vadd.xlane.f32.xlu0 %v426_v34 }
  0x2a   : > { %1758 = vmatprep.mubr.msk.f32.mxu1 %vm314_vm0, %v294_v16  ;;  %1929 = vmatpush3.bf16.xpose.msk.msra.mxu1 %vm2437_vm2, %v2507_v36 }
  0x2b   : > { %1930 = vmatprep.subr.bf16.mxu1 %v2296_v1 }
  0x2c   : > { %436 = vadd.xlane.f32.xlu1 %v435_v43 }
  0x2d   : > { %1759 = vmatmul.mubr.msk.f32.gmra.mrb[2].mxu1 %vm314_vm0, %v2459_v17  ;;  %433 = vadd.xlane.f32.xlu0 %v432_v41 }
  0x2e   : > { %1761 = vmatprep.mubr.msk.f32.mxu1 %vm314_vm0, %v2474_v24 }
  0x30   : > { %442 = vadd.xlane.f32.xlu1 %v441_v50 }
  0x31   : > { %1762 = vmatmul.mubr.msk.f32.gmra.mrb[4].mxu1 %vm314_vm0, %v2480_v26  ;;  %439 = vadd.xlane.f32.xlu0 %v438_v47 }
  0x32   : > { %1764 = vmatprep.mubr.msk.f32.mxu1 %vm314_vm0, %v2495_v32  ;;  %1933 = vmatpush3.bf16.xpose.msk.msra.mxu1 %vm2437_vm2, %v2546_v49 }
  0x33   : > { %1934 = vmatprep.subr.bf16.mxu1 %v2296_v1 }
  0x34   : > { %448 = vadd.xlane.f32.xlu1 %v447_v56 }
  0x35   : > { %1765 = vmatmul.mubr.msk.f32.gmra.mrb[6].mxu1 %vm314_vm0, %v2500_v33  ;;  %445 = vadd.xlane.f32.xlu0 %v444_v54 }
  0x36   : > { %1767 = vmatprep.mubr.msk.f32.mxu1 %vm314_vm0, %v2516_v39 }
  0x38   : > { %454 = vadd.xlane.f32.xlu1 %v453_v63 }
  0x39   : > { %1768 = vmatmul.mubr.msk.f32.gmra.mrb[8].mxu1 %vm314_vm0, %v2520_v40  ;;  %451 = vadd.xlane.f32.xlu0 %v450_v60 }
  0x3a   : > { %1770 = vmatprep.mubr.msk.f32.mxu1 %vm314_vm0, %v2535_v45  ;;  %1937 = vmatpush3.bf16.xpose.msk.msra.mxu1 %vm2437_vm2, %v2586_v62 }
  0x3b   : > { %1938 = vmatprep.subr.bf16.mxu1 %v2296_v1 }
  0x3c   : > { %460 = vadd.xlane.f32.xlu1 %v459_v8 }
  0x3d   : > { %1771 = vmatmul.mubr.msk.f32.gmra.mrb[10].mxu1 %vm314_vm0, %v2540_v46  ;;  %457 = vadd.xlane.f32.xlu0 %v456_v3 }
  0x3e   : > { %1773 = vmatprep.mubr.msk.f32.mxu1 %vm314_vm0, %v2554_v52 }
  0x41   : > { %1774 = vmatmul.mubr.msk.f32.gmra.mrb[12].mxu1 %vm314_vm0, %v2559_v53 }
  0x42   : > { %1776 = vmatprep.mubr.msk.f32.mxu1 %vm314_vm0, %v2574_v58  ;;  %1941 = vmatpush3.bf16.xpose.msk.msra.mxu1 %vm2437_vm2, %v2607_v9 }
  0x43   : > { %1942 = vmatprep.subr.bf16.mxu1 %v2296_v1 }
  0x45   : > { %1777 = vmatmul.mubr.msk.f32.gmra.mrb[14].mxu1 %vm314_vm0, %v2579_v59 }
  0x46   : > { %1839 = vmatprep.mubr.msk.f32.mxu1 %vm2297_vm1, %v2298_v2 }
  0x4a   : > { %1945 = vmatpush3.bf16.xpose.msk.msra.mxu1 %vm2437_vm2, %v2623_v11 }
  0x4b   : > { %1946 = vmatprep.subr.bf16.mxu1 %v2296_v1 }
  0x52   : > { %1949 = vmatpush3.bf16.xpose.msk.msra.mxu1 %vm2437_vm2, %v2631_v12 }
  0x53   : > { %1950 = vmatprep.subr.bf16.mxu1 %v2296_v1 }
  0x5a   : > { %1953 = vmatpush3.bf16.xpose.msk.msra.mxu1 %vm2437_vm2, %v2639_v13 }
  0x5b   : > { %1954 = vmatprep.subr.bf16.mxu1 %v2296_v1 }
  0x62   : > { %1957 = vmatpush3.bf16.xpose.msk.msra.mxu1 %vm2437_vm2, %v2647_v14 }
  0x63   : > { %1990 = vmatprep.subr.bf16.mxu1 %v2296_v1 }
  0x69   : > { %1840 = vmatmul.mubr.msk.f32.vlgmr.msra.gmra.mrb[16].mxu1 %vm314_vm0, %v2414_v4 }
  0x6a   : > { %1909 = vmatprep.mubr.msk.f32.mxu1 %vm2297_vm1, %v2298_v2 }
  0xad   : > { %v422_v16 = vpop.xlane.xlu1 %421 }
  0xae   : > { %v416_v18 = vpop.xlane.xlu0 %415 }
  0xb1   : > { %v425_v19 = vpop.xlane.xlu1 %424 }
  0xb2   : > { %v419_v20 = vpop.xlane.xlu0 %418 }
  0xb5   : > { %v431_v21 = vpop.xlane.xlu1 %430 }
  0xb6   : > { %v428_v23 = vpop.xlane.xlu0 %427 }
  0xb9   : > { %v437_v4 = vpop.xlane.xlu1 %436 }
  0xba   : > { %v434_v37 = vpop.xlane.xlu0 %433 }
  0xbd   : > { %v443_v55 = vpop.xlane.xlu1 %442 }
  0xbe   : > { %v440_v61 = vpop.xlane.xlu0 %439 }
  0xf9   : > { %v390_v22 = vpop.f32.mrb[0].mxu0 }
  0xfa   : > { %v1750_v25 = vpop.f32.mrb[1].mxu0  ;;  %v2658_v27 = vrot.slane %v390_v22, %v2423_v6 }
  0xfc   : > { %v1757_v28 = vpop.f32.mrb[0].mxu1 }
  0xfd   : > { %v588_v30 = vadd.f32 %v1757_v28, %v419_v20  ;;  %v582_v31 = vpop.f32.mrb[1].mxu1  ;;  %v446_v28 = vpop.xlane.xlu0 %445 }
  0xfe   : > { %v583_v34 = vadd.f32 %v582_v31, %v416_v18 }
  0xff   : > { %v2661_v35 = vadd.f32 %v2658_v27, %v588_v30 }
 0x100   : > { %v1760_v38 = vpop.f32.mrb[2].mxu1  ;;  %v2664_v41 = vadd.f32 %v2658_v27, %v583_v34 }
 0x101   : > { %v598_v42 = vadd.f32 %v1760_v38, %v425_v19  ;;  %v592_v43 = vpop.f32.mrb[3].mxu1  ;;  %v685_v44 = vsel %vm681_vm3, %v2661_v35, -inf }
 0x102   : > { %v593_v47 = vadd.f32 %v592_v43, %v422_v16  ;;  %686 = vmax.xlane.f32.xlu1 %v685_v44  ;;  %v682_v48 = vsel %vm681_vm3, %v2664_v41, -inf }
 0x103   : > { %683 = vmax.xlane.f32.xlu0 %v682_v48  ;;  %v2671_v50 = vadd.f32 %v2658_v27, %v598_v42 }
 0x104   : > { %v1763_v51 = vpop.f32.mrb[4].mxu1  ;;  %v2674_v54 = vadd.f32 %v2658_v27, %v593_v47 }
 0x105   : > { %v608_v56 = vadd.f32 %v1763_v51, %v431_v21  ;;  %v602_v57 = vpop.f32.mrb[5].mxu1  ;;  %v691_v60 = vsel %vm681_vm3, %v2671_v50, -inf }
 0x106   : > { %v603_v63 = vadd.f32 %v602_v57, %v428_v23  ;;  %692 = vmax.xlane.f32.xlu1 %v691_v60  ;;  %v688_v0 = vsel %vm681_vm3, %v2674_v54, -inf  ;;  %v449_v23 = vpop.xlane.xlu1 %448  ;;  %v452_v57 = vpop.xlane.xlu0 %451 }
 0x107   : > { %689 = vmax.xlane.f32.xlu0 %v688_v0  ;;  %v2681_v3 = vadd.f32 %v2658_v27, %v608_v56 }
 0x108   : > { %v1766_v8 = vpop.f32.mrb[6].mxu1  ;;  %v2684_v16 = vadd.f32 %v2658_v27, %v603_v63 }
 0x109   : > { %v618_v18 = vadd.f32 %v1766_v8, %v437_v4  ;;  %v612_v19 = vpop.f32.mrb[7].mxu1  ;;  %v697_v20 = vsel %vm681_vm3, %v2681_v3, -inf }
 0x10a   : > { %v613_v21 = vadd.f32 %v612_v19, %v434_v37  ;;  %698 = vmax.xlane.f32.xlu1 %v697_v20  ;;  %v694_v22 = vsel %vm681_vm3, %v2684_v16, -inf  ;;  %v455_v48 = vpop.xlane.xlu1 %454 }
 0x10b   : > { %695 = vmax.xlane.f32.xlu0 %v694_v22  ;;  %v2691_v25 = vadd.f32 %v2658_v27, %v618_v18 }
 0x10c   : > { %v1769_v30 = vpop.f32.mrb[8].mxu1  ;;  %v2694_v31 = vadd.f32 %v2658_v27, %v613_v21 }
 0x10d   : > { %v628_v34 = vadd.f32 %v1769_v30, %v443_v55  ;;  %v622_v4 = vpop.f32.mrb[9].mxu1  ;;  %v703_v38 = vsel %vm681_vm3, %v2691_v25, -inf }
 0x10e   : > { %v623_v37 = vadd.f32 %v622_v4, %v440_v61  ;;  %704 = vmax.xlane.f32.xlu1 %v703_v38  ;;  %v700_v42 = vsel %vm681_vm3, %v2694_v31, -inf }
 0x10f   : > { %701 = vmax.xlane.f32.xlu0 %v700_v42  ;;  %v2701_v43 = vadd.f32 %v2658_v27, %v628_v34 }
 0x110   : > { %v1772_v44 = vpop.f32.mrb[10].mxu1  ;;  %v2704_v47 = vadd.f32 %v2658_v27, %v623_v37 }
 0x111   : > { %v638_v51 = vadd.f32 %v1772_v44, %v449_v23  ;;  %v632_v55 = vpop.f32.mrb[11].mxu1  ;;  %v709_v56 = vsel %vm681_vm3, %v2701_v43, -inf  ;;  %v461_v23 = vpop.xlane.xlu1 %460 }
 0x112   : > { %v633_v60 = vadd.f32 %v632_v55, %v446_v28  ;;  %710 = vmax.xlane.f32.xlu1 %v709_v56  ;;  %v706_v61 = vsel %vm681_vm3, %v2704_v47, -inf  ;;  %v458_v28 = vpop.xlane.xlu0 %457 }
 0x113   : > { %707 = vmax.xlane.f32.xlu0 %v706_v61  ;;  %v2711_v63 = vadd.f32 %v2658_v27, %v638_v51 }
 0x114   : > { %v1775_v0 = vpop.f32.mrb[12].mxu1  ;;  %v2714_v8 = vadd.f32 %v2658_v27, %v633_v60 }
 0x115   : > { %v648_v18 = vadd.f32 %v1775_v0, %v455_v48  ;;  %v642_v19 = vpop.f32.mrb[13].mxu1  ;;  %v715_v20 = vsel %vm681_vm3, %v2711_v63, -inf }
 0x116   : > { %v643_v21 = vadd.f32 %v642_v19, %v452_v57  ;;  %716 = vmax.xlane.f32.xlu1 %v715_v20  ;;  %v712_v22 = vsel %vm681_vm3, %v2714_v8, -inf }
 0x117   : > { %713 = vmax.xlane.f32.xlu0 %v712_v22  ;;  %v2721_v30 = vadd.f32 %v2658_v27, %v648_v18 }
 0x118   : > { %v1778_v34 = vpop.f32.mrb[14].mxu1  ;;  %v2724_v4 = vadd.f32 %v2658_v27, %v643_v21 }
 0x119   : > { %v658_v38 = vadd.f32 %v1778_v34, %v461_v23  ;;  %v652_v37 = vpop.f32.mrb[15].mxu1  ;;  %v721_v42 = vsel %vm681_vm3, %v2721_v30, -inf }
 0x11a   : > { %v653_v44 = vadd.f32 %v652_v37, %v458_v28  ;;  %722 = vmax.xlane.f32.xlu1 %v721_v42  ;;  %v718_v48 = vsel %vm681_vm3, %v2724_v4, -inf }
 0x11b   : > { %719 = vmax.xlane.f32.xlu0 %v718_v48  ;;  %v2731_v51 = vadd.f32 %v2658_v27, %v658_v38  ;;  %v2750_v48 = vld [vmem:[%s281_s26] ss:$0 sm:$0xff]  ;;  %s1648_s26 = sshll.u32 %s2282_s22, 1 }
 0x11c   : > { %v2734_v55 = vadd.f32 %v2658_v27, %v653_v44  ;;  %s1454_s27 = sadd.s32 %s2278_s21, %s1648_s26  ;;  %s2302_s21 = smov [#allocation2]  }
 0x11d   : > { %v727_v56 = vsel %vm681_vm3, %v2731_v51, -inf  ;;  %s2204_s22 = sshll.u32 %s2302_s21, 4  ;;  %s2205_s22 = int_to_ptr.vmem [resolvable:$false] %s2204_s22 }
 0x11e   : > { %728 = vmax.xlane.f32.xlu1 %v727_v56  ;;  %v724_v57 = vsel %vm681_vm3, %v2734_v55, -inf }
 0x11f   : > { %725 = vmax.xlane.f32.xlu0 %v724_v57 }
 0x18f   : > { %v687_v60 = vpop.xlane.xlu1 %686 }
 0x190   : > { %v731_v61 = vsub.f32 %v2661_v35, %v687_v60  ;;  %v684_v0 = vpop.xlane.xlu0 %683 }
 0x191   : > { %v730_v18 = vsub.f32 %v2664_v41, %v684_v0 }
 0x192   : > { %v748_v19 = vmul.f32 1.442695, %v731_v61 }
 0x193   : > { %v746_v20 = vmul.f32 1.442695, %v730_v18  ;;  %v693_v21 = vpop.xlane.xlu1 %692 }
 0x194   : > { %2131 = vpow2.f32 %v748_v19  ;;  %v733_v27 = vsub.f32 %v2671_v50, %v693_v21  ;;  %v690_v22 = vpop.xlane.xlu0 %689 }
 0x195   : > { %2133 = vpow2.f32 %v746_v20  ;;  %v732_v23 = vsub.f32 %v2674_v54, %v690_v22 }
 0x196   : > { %v752_v28 = vmul.f32 1.442695, %v733_v27 }
 0x197   : > { %v750_v34 = vmul.f32 1.442695, %v732_v23  ;;  %v699_v38 = vpop.xlane.xlu1 %698 }
 0x198   : > { %2135 = vpow2.f32 %v752_v28  ;;  %v735_v35 = vsub.f32 %v2681_v3, %v699_v38  ;;  %v696_v37 = vpop.xlane.xlu0 %695 }
 0x199   : > { %2137 = vpow2.f32 %v750_v34  ;;  %v734_v41 = vsub.f32 %v2684_v16, %v696_v37 }
 0x19a   : > { %v756_v42 = vmul.f32 1.442695, %v735_v35 }
 0x19b   : > { %v754_v50 = vmul.f32 1.442695, %v734_v41  ;;  %v705_v44 = vpop.xlane.xlu1 %704 }
 0x19c   : > { %2139 = vpow2.f32 %v756_v42  ;;  %v737_v54 = vsub.f32 %v2691_v25, %v705_v44  ;;  %v702_v56 = vpop.xlane.xlu0 %701 }
 0x19d   : > { %2141 = vpow2.f32 %v754_v50  ;;  %v736_v3 = vsub.f32 %v2694_v31, %v702_v56 }
 0x19e   : > { %v2132_v57 = vpop.eup %2131  ;;  %v760_v60 = vmul.f32 1.442695, %v737_v54 }
 0x19f   : > { %v2134_v61 = vpop.eup %2133  ;;  %v758_v0 = vmul.f32 1.442695, %v736_v3  ;;  %v711_v18 = vpop.xlane.xlu1 %710  ;;  %v2755_v19 = vmul.f32 %v2132_v57, %v2750_v48 }
 0x1a0   : > { %2143 = vpow2.f32 %v760_v60  ;;  %v739_v16 = vsub.f32 %v2701_v43, %v711_v18  ;;  %v708_v20 = vpop.xlane.xlu0 %707  ;;  %v2759_v21 = vmul.f32 %v2134_v61, %v2750_v48 }
 0x1a1   : > { %2145 = vpow2.f32 %v758_v0  ;;  %v738_v25 = vsub.f32 %v2704_v47, %v708_v20  ;;  %v803_v31 = vsel %vm681_vm3, %v2755_v19, 0.0 }
 0x1a2   : > { %v2136_v27 = vpop.eup %2135  ;;  %v764_v22 = vmul.f32 1.442695, %v739_v16  ;;  %804 = vadd.xlane.f32.xlu1 %v803_v31  ;;  %v800_v23 = vsel %vm681_vm3, %v2759_v21, 0.0 }
 0x1a3   : > { %v2138_v28 = vpop.eup %2137  ;;  %v762_v34 = vmul.f32 1.442695, %v738_v25  ;;  %v717_v38 = vpop.xlane.xlu1 %716  ;;  %801 = vadd.xlane.f32.xlu0 %v800_v23  ;;  %v2767_v43 = vmul.f32 %v2136_v27, %v2750_v48 }
 0x1a4   : > { %2147 = vpow2.f32 %v764_v22  ;;  %v741_v35 = vsub.f32 %v2711_v63, %v717_v38  ;;  %v714_v47 = vpop.xlane.xlu0 %713  ;;  %v2771_v37 = vmul.f32 %v2138_v28, %v2750_v48 }
 0x1a5   : > { %2149 = vpow2.f32 %v762_v34  ;;  %v740_v41 = vsub.f32 %v2714_v8, %v714_v47  ;;  %v809_v42 = vsel %vm681_vm3, %v2767_v43, 0.0 }
 0x1a6   : > { %v2140_v50 = vpop.eup %2139  ;;  %v768_v44 = vmul.f32 1.442695, %v741_v35  ;;  %810 = vadd.xlane.f32.xlu1 %v809_v42  ;;  %v806_v54 = vsel %vm681_vm3, %v2771_v37, 0.0 }
 0x1a7   : > { %v2142_v56 = vpop.eup %2141  ;;  %v766_v3 = vmul.f32 1.442695, %v740_v41  ;;  %v723_v57 = vpop.xlane.xlu1 %722  ;;  %807 = vadd.xlane.f32.xlu0 %v806_v54  ;;  %v2779_v63 = vmul.f32 %v2140_v50, %v2750_v48 }
 0x1a8   : > { %2151 = vpow2.f32 %v768_v44  ;;  %v743_v60 = vsub.f32 %v2721_v30, %v723_v57  ;;  %v720_v8 = vpop.xlane.xlu0 %719  ;;  %v2783_v61 = vmul.f32 %v2142_v56, %v2750_v48 }
 0x1a9   : > { %2153 = vpow2.f32 %v766_v3  ;;  %v742_v0 = vsub.f32 %v2724_v4, %v720_v8  ;;  %v815_v18 = vsel %vm681_vm3, %v2779_v63, 0.0 }
 0x1aa   : > { %v2144_v16 = vpop.eup %2143  ;;  %v772_v20 = vmul.f32 1.442695, %v743_v60  ;;  %816 = vadd.xlane.f32.xlu1 %v815_v18  ;;  %v812_v25 = vsel %vm681_vm3, %v2783_v61, 0.0 }
 0x1ab   : > { %v2146_v31 = vpop.eup %2145  ;;  %v770_v27 = vmul.f32 1.442695, %v742_v0  ;;  %v729_v22 = vpop.xlane.xlu1 %728  ;;  %813 = vadd.xlane.f32.xlu0 %v812_v25  ;;  %v2791_v30 = vmul.f32 %v2144_v16, %v2750_v48 }
 0x1ac   : > { %2155 = vpow2.f32 %v772_v20  ;;  %v745_v23 = vsub.f32 %v2731_v51, %v729_v22  ;;  %v726_v4 = vpop.xlane.xlu0 %725  ;;  %v2795_v28 = vmul.f32 %v2146_v31, %v2750_v48 }
 0x1ad   : > { %2157 = vpow2.f32 %v770_v27  ;;  %v744_v34 = vsub.f32 %v2734_v55, %v726_v4  ;;  %v821_v38 = vsel %vm681_vm3, %v2791_v30, 0.0 }
 0x1ae   : > { %v2148_v35 = vpop.eup %2147  ;;  %v776_v47 = vmul.f32 1.442695, %v745_v23  ;;  %822 = vadd.xlane.f32.xlu1 %v821_v38  ;;  %v818_v41 = vsel %vm681_vm3, %v2795_v28, 0.0 }
 0x1af   : > { %v2150_v42 = vpop.eup %2149  ;;  %v774_v50 = vmul.f32 1.442695, %v744_v34  ;;  %819 = vadd.xlane.f32.xlu0 %v818_v41  ;;  %v2803_v51 = vmul.f32 %v2148_v35, %v2750_v48  ;;  %v2846_v41 = vld [vmem:[%s1090_s30] sm:$0xff]  ;;  %s1649_s30 = sshll.u32 %s1454_s27, 7 }
 0x1b0   : > { %2159 = vpow2.f32 %v776_v47  ;;  %v2806_v44 = vmul.f32 %v2150_v42, %v2750_v48  ;;  %v1096_v47 = vrot.slane %v2488_v29, %v2423_v6 }
 0x1b1   : > { %2161 = vpow2.f32 %v774_v50  ;;  %v827_v55 = vsel %vm681_vm3, %v2803_v51, 0.0 }
 0x1b2   : > { %v2152_v54 = vpop.eup %2151  ;;  %828 = vadd.xlane.f32.xlu1 %v827_v55  ;;  %v824_v56 = vsel %vm681_vm3, %v2806_v44, 0.0  ;;  %v1097_v42 = vmul.f32 %v1096_v47, %v2846_v41 }
 0x1b3   : > { %v2154_v3 = vpop.eup %2153  ;;  %825 = vadd.xlane.f32.xlu0 %v824_v56  ;;  %v2813_v57 = vmul.f32 %v2152_v54, %v2750_v48 }
 0x1b4   : > { %v2816_v60 = vmul.f32 %v2154_v3, %v2750_v48 }
 0x1b5   : > { %v833_v8 = vsel %vm681_vm3, %v2813_v57, 0.0 }
 0x1b6   : > { %v2156_v0 = vpop.eup %2155  ;;  %834 = vadd.xlane.f32.xlu1 %v833_v8  ;;  %v830_v18 = vsel %vm681_vm3, %v2816_v60, 0.0 }
 0x1b7   : > { %v2158_v16 = vpop.eup %2157  ;;  %831 = vadd.xlane.f32.xlu0 %v830_v18  ;;  %v2823_v20 = vmul.f32 %v2156_v0, %v2750_v48 }
 0x1b8   : > { %v2826_v25 = vmul.f32 %v2158_v16, %v2750_v48 }
 0x1b9   : > { %v839_v31 = vsel %vm681_vm3, %v2823_v20, 0.0 }
 0x1ba   : > { %v2160_v27 = vpop.eup %2159  ;;  %840 = vadd.xlane.f32.xlu1 %v839_v31  ;;  %v836_v22 = vsel %vm681_vm3, %v2826_v25, 0.0 }
 0x1bb   : > { %v2162_v23 = vpop.eup %2161  ;;  %837 = vadd.xlane.f32.xlu0 %v836_v22  ;;  %v2833_v4 = vmul.f32 %v2160_v27, %v2750_v48 }
 0x1bc   : > { %v2836_v34 = vmul.f32 %v2162_v23, %v2750_v48  ;;  %v1098_v48 = vsel %vm314_vm0, %v1097_v42, 0.0 }
 0x1bd   : > { %v845_v38 = vsel %vm681_vm3, %v2833_v4, 0.0 }
 0x1be   : > { %846 = vadd.xlane.f32.xlu1 %v845_v38  ;;  %v842_v35 = vsel %vm681_vm3, %v2836_v34, 0.0 }
 0x1bf   : > { %843 = vadd.xlane.f32.xlu0 %v842_v35 }
 0x1c3   : > { %1099 = vadd.xlane.f32.xlu0 %v1098_v48 }
 0x22f   : > { %v805_v50 = vpop.xlane.xlu1 %804 }
 0x230   : > { %2163 = vrcp.f32 %v805_v50  ;;  %v802_v55 = vpop.xlane.xlu0 %801 }
 0x231   : > { %2165 = vrcp.f32 %v802_v55 }
 0x233   : > { %v811_v54 = vpop.xlane.xlu1 %810 }
 0x234   : > { %2167 = vrcp.f32 %v811_v54  ;;  %v808_v56 = vpop.xlane.xlu0 %807 }
 0x235   : > { %2169 = vrcp.f32 %v808_v56 }
 0x237   : > { %v817_v3 = vpop.xlane.xlu1 %816 }
 0x238   : > { %2171 = vrcp.f32 %v817_v3  ;;  %v814_v8 = vpop.xlane.xlu0 %813 }
 0x239   : > { %2173 = vrcp.f32 %v814_v8 }
 0x23a   : > { %v2164_v29 = vpop.eup %2163 }
 0x23b   : > { %v2166_v0 = vpop.eup %2165  ;;  %v823_v18 = vpop.xlane.xlu1 %822  ;;  %v881_v27 = vmul.f32 %v2164_v29, %v2755_v19 }
 0x23c   : > { %2175 = vrcp.f32 %v823_v18  ;;  %v820_v16 = vpop.xlane.xlu0 %819  ;;  %v880_v31 = vmul.f32 %v2166_v0, %v2759_v21 }
 0x23d   : > { %2177 = vrcp.f32 %v820_v16 }
 0x23e   : > { %v2168_v22 = vpop.eup %2167  ;;  %1783 = vmatprep.mubr.msk.f32.mxu0 %vm681_vm3, %v880_v31 }
 0x23f   : > { %v2170_v23 = vpop.eup %2169  ;;  %v829_v38 = vpop.xlane.xlu1 %828  ;;  %1784 = vmatmul.mubr.msk.f32.vlgmr.msra.gmra.mrb[2].mxu0 %vm681_vm3, %v881_v27  ;;  %v883_v21 = vmul.f32 %v2168_v22, %v2767_v43 }
 0x240   : > { %2179 = vrcp.f32 %v829_v38  ;;  %1961 = vmatpush3.bf16.xpose.msk.msra.mxu0 %vm2437_vm2, %v2507_v36  ;;  %v826_v35 = vpop.xlane.xlu0 %825  ;;  %v882_v47 = vmul.f32 %v2170_v23, %v2771_v37 }
 0x241   : > { %2181 = vrcp.f32 %v826_v35  ;;  %1962 = vmatprep.subr.bf16.mxu0 %v2296_v1 }
 0x242   : > { %v2172_v19 = vpop.eup %2171  ;;  %1786 = vmatprep.mubr.msk.f32.mxu0 %vm681_vm3, %v882_v47 }
 0x243   : > { %v2174_v42 = vpop.eup %2173  ;;  %v835_v48 = vpop.xlane.xlu1 %834  ;;  %1787 = vmatmul.mubr.msk.f32.gmra.mrb[4].mxu0 %vm681_vm3, %v883_v21  ;;  %v885_v36 = vmul.f32 %v2172_v19, %v2779_v63 }
 0x244   : > { %2183 = vrcp.f32 %v835_v48  ;;  %v832_v50 = vpop.xlane.xlu0 %831  ;;  %v884_v55 = vmul.f32 %v2174_v42, %v2783_v61 }
 0x245   : > { %2185 = vrcp.f32 %v832_v50 }
 0x246   : > { %v2176_v37 = vpop.eup %2175  ;;  %1789 = vmatprep.mubr.msk.f32.mxu0 %vm681_vm3, %v884_v55 }
 0x247   : > { %v2178_v43 = vpop.eup %2177  ;;  %v841_v54 = vpop.xlane.xlu1 %840  ;;  %1790 = vmatmul.mubr.msk.f32.gmra.mrb[6].mxu0 %vm681_vm3, %v885_v36  ;;  %v887_v61 = vmul.f32 %v2176_v37, %v2791_v30 }
 0x248   : > { %2187 = vrcp.f32 %v841_v54  ;;  %1965 = vmatpush3.bf16.xpose.msk.msra.mxu0 %vm2437_vm2, %v2546_v49  ;;  %v838_v56 = vpop.xlane.xlu0 %837  ;;  %v886_v3 = vmul.f32 %v2178_v43, %v2795_v28 }
 0x249   : > { %2189 = vrcp.f32 %v838_v56  ;;  %1966 = vmatprep.subr.bf16.mxu0 %v2296_v1 }
 0x24a   : > { %v2180_v63 = vpop.eup %2179  ;;  %1792 = vmatprep.mubr.msk.f32.mxu0 %vm681_vm3, %v886_v3 }
 0x24b   : > { %v2182_v8 = vpop.eup %2181  ;;  %v847_v29 = vpop.xlane.xlu1 %846  ;;  %1793 = vmatmul.mubr.msk.f32.gmra.mrb[8].mxu0 %vm681_vm3, %v887_v61  ;;  %v889_v49 = vmul.f32 %v2180_v63, %v2803_v51 }
 0x24c   : > { %2191 = vrcp.f32 %v847_v29  ;;  %v844_v0 = vpop.xlane.xlu0 %843  ;;  %v888_v18 = vmul.f32 %v2182_v8, %v2806_v44 }
 0x24d   : > { %2193 = vrcp.f32 %v844_v0 }
 0x24e   : > { %v2184_v28 = vpop.eup %2183  ;;  %1795 = vmatprep.mubr.msk.f32.mxu0 %vm681_vm3, %v888_v18 }
 0x24f   : > { %v2186_v30 = vpop.eup %2185  ;;  %1796 = vmatmul.mubr.msk.f32.gmra.mrb[10].mxu0 %vm681_vm3, %v889_v49  ;;  %v891_v31 = vmul.f32 %v2184_v28, %v2813_v57 }
 0x250   : > { %1969 = vmatpush3.bf16.xpose.msk.msra.mxu0 %vm2437_vm2, %v2586_v62  ;;  %v890_v16 = vmul.f32 %v2186_v30, %v2816_v60  ;;  %v1100_v61 = vpop.xlane.xlu0 %1099 }
 0x251   : > { %1970 = vmatprep.subr.bf16.mxu0 %v2296_v1 }
 0x252   : > { %v2188_v44 = vpop.eup %2187  ;;  %1798 = vmatprep.mubr.msk.f32.mxu0 %vm681_vm3, %v890_v16 }
 0x253   : > { %v2190_v51 = vpop.eup %2189  ;;  %1799 = vmatmul.mubr.msk.f32.gmra.mrb[12].mxu0 %vm681_vm3, %v891_v31  ;;  %v893_v22 = vmul.f32 %v2188_v44, %v2823_v20 }
 0x254   : > { %v892_v27 = vmul.f32 %v2190_v51, %v2826_v25 }
 0x256   : > { %v2192_v23 = vpop.eup %2191  ;;  %1801 = vmatprep.mubr.msk.f32.mxu0 %vm681_vm3, %v892_v27 }
 0x257   : > { %v2194_v62 = vpop.eup %2193  ;;  %1802 = vmatmul.mubr.msk.f32.gmra.mrb[14].mxu0 %vm681_vm3, %v893_v22  ;;  %v895_v60 = vmul.f32 %v2192_v23, %v2833_v4 }
 0x258   : > { %1973 = vmatpush3.bf16.xpose.msk.msra.mxu0 %vm2437_vm2, %v2607_v9  ;;  %v894_v57 = vmul.f32 %v2194_v62, %v2836_v34  ;;  %v1170_v9 = vpop.f32.mrb[16].mxu1 }
 0x259   : > { %1974 = vmatprep.subr.bf16.mxu0 %v2296_v1  ;;  %v1250_v63 = vrot.slane %v1170_v9, %v2423_v6 }
 0x25a   : > { %1804 = vmatprep.mubr.msk.f32.mxu0 %vm681_vm3, %v894_v57 }
 0x25b   : > { %1805 = vmatmul.mubr.msk.f32.gmra.mrb[16].mxu0 %vm681_vm3, %v895_v60 }
 0x25c   : > { %1874 = vmatprep.mubr.msk.f32.mxu0 %vm2297_vm1, %v2298_v2  ;;  %v1092_v2 = vmul.f32 %v2421_v5, %v2846_v41 }
 0x260   : > { %1977 = vmatpush3.bf16.xpose.msk.msra.mxu0 %vm2437_vm2, %v2623_v11  ;;  %v1841_v11 = vpop.f32.mrb[17].mxu1 }
 0x261   : > { %1978 = vmatprep.subr.bf16.mxu0 %v2296_v1  ;;  %v2199_v11 = vld [vmem:[%s2433_s13 + $0x10] sm:$0xff]  ;;  %s1567_s13 = sshll.u32 %s266_s12, 3 }
 0x262   : > { %s268_s15 = scalar_lea.vmem [#allocation2], %s1567_s13  ;;  %s1443_s13 = scalar_lea.sflag [#allocation3], %s266_s12 }
 0x263   : > { %1418 = vst.msk [vmem:[%s268_s15] sm:$0xff] %vm314_vm0, %v2846_v41  ;;  %s1458_s9 = sshll.u32 %s268_s15, 4  ;;  %s2985_s9 = int_to_ptr.vmem [resolvable:$true] %s1458_s9 }
 0x264   : > { %p2207_p2 = scmp.lt.s32.totalorder %s2985_s9, %s2205_s22 }
 0x268   : > { %1981 = vmatpush3.bf16.xpose.msk.msra.mxu0 %vm2437_vm2, %v2631_v12 }
 0x269   : > { %1982 = vmatprep.subr.bf16.mxu0 %v2296_v1 }
 0x270   : > { %1985 = vmatpush3.bf16.xpose.msk.msra.mxu0 %vm2437_vm2, %v2639_v13 }
 0x271   : > { %1986 = vmatprep.subr.bf16.mxu0 %v2296_v1 }
 0x278   : > { %1989 = vmatpush3.bf16.xpose.msk.msra.mxu0 %vm2437_vm2, %v2647_v14 }
 0x27f   : > { %1875 = vmatmul.mubr.msk.f32.vlgmr.msra.gmra.mrb[18].mxu0 %vm314_vm0, %v1092_v2 }
 0x312   : > { %v1785_v12 = vpop.f32.mrb[2].mxu0 }
 0x313   : > { %v1010_v20 = vpop.f32.mrb[3].mxu0 }
 0x314   : > { %v2091_v25 = vpack.i.bf16 %v1785_v12, %v1010_v20 }
 0x316   : > { %2092 = vrot.lane.b32.xlu0 %v2091_v25, %s2299_s8  ;;  %v1788_v13 = vpop.f32.mrb[4].mxu0 }
 0x317   : > { %v1020_v4 = vpop.f32.mrb[5].mxu0 }
 0x318   : > { %v2096_v34 = vpack.i.bf16 %v1788_v13, %v1020_v4 }
 0x31a   : > { %v1791_v38 = vpop.f32.mrb[6].mxu0 }
 0x31b   : > { %v1030_v35 = vpop.f32.mrb[7].mxu0 }
 0x31c   : > { %v2101_v7 = vpack.i.bf16 %v1791_v38, %v1030_v35 }
 0x31e   : > { %2102 = vrot.lane.b32.xlu0 %v2101_v7, %s2299_s8  ;;  %v1794_v14 = vpop.f32.mrb[8].mxu0 }
 0x31f   : > { %v1040_v5 = vpop.f32.mrb[9].mxu0 }
 0x320   : > { %v2106_v47 = vpack.i.bf16 %v1794_v14, %v1040_v5 }
 0x322   : > { %2107 = vrot.lane.b32.xlu0 %v2106_v47, %s2299_s8  ;;  %v1797_v21 = vpop.f32.mrb[10].mxu0 }
 0x323   : > { %v1050_v19 = vpop.f32.mrb[11].mxu0 }
 0x324   : > { %v2111_v42 = vpack.i.bf16 %v1797_v21, %v1050_v19 }
 0x326   : > { %2112 = vrot.lane.b32.xlu0 %v2111_v42, %s2299_s8  ;;  %v1800_v48 = vpop.f32.mrb[12].mxu0 }
 0x327   : > { %v1060_v50 = vpop.f32.mrb[13].mxu0 }
 0x328   : > { %v2116_v55 = vpack.i.bf16 %v1800_v48, %v1060_v50 }
 0x32a   : > { %2117 = vrot.lane.b32.xlu0 %v2116_v55, %s2299_s8  ;;  %v1803_v36 = vpop.f32.mrb[14].mxu0 }
 0x32b   : > { %v1070_v37 = vpop.f32.mrb[15].mxu0 }
 0x32c   : > { %v2121_v43 = vpack.i.bf16 %v1803_v36, %v1070_v37 }
 0x32e   : > { %2122 = vrot.lane.b32.xlu0 %v2121_v43, %s2299_s8  ;;  %v1806_v54 = vpop.f32.mrb[16].mxu0 }
 0x32f   : > { %v1080_v56 = vpop.f32.mrb[17].mxu0 }
 0x330   : > { %v2126_v3 = vpack.i.bf16 %v1806_v54, %v1080_v56 }
 0x332   : > { %2127 = vrot.lane.b32.xlu0 %v2126_v3, %s2299_s8 }
 0x352   : > { %v1243_v8 = vpop.f32.mrb[18].mxu0 }
 0x353   : > { %v1244_v29 = vadd.f32 %v1243_v8, %v1100_v61  ;;  %v1876_v0 = vpop.f32.mrb[19].mxu0 }
 0x355   : > { %v1251_v18 = vadd.f32 %v1250_v63, %v1244_v29 }
 0x357   : > { %1252 = vmax.xlane.f32.xlu1 %v1251_v18 }
 0x368   : > { %2097 = vrot.lane.b32.xlu1 %v2096_v34, %s2299_s8 }
 0x388   : > { %v2093_v49 = vpop.permute.xlu0 %2092 }
 0x389   : > { %v2095_v28 = vunpack.i.h.bf16 %v2093_v49  ;;  %v2094_v30 = vunpack.i.l.bf16 %v2093_v49 }
 0x38b   : > { %v1333_v16 = vsel %vm314_vm0, %v2455_v15, %v2095_v28  ;;  %v1332_v31 = vsel %vm314_vm0, %v2444_v10, %v2094_v30 }
 0x38c   : > { %v1991_v44 = vpack.c.bf16 %v1333_v16, %v1332_v31 }
 0x38e   : > { %1992 = vmatpush3.bf16.msra.mxu1 %v1991_v44 }
 0x38f   : > { %1993 = vmatprep.subr.bf16.mxu1 %v2296_v1 }
 0x390   : > { %v2103_v6 = vpop.permute.xlu0 %2102 }
 0x391   : > { %v2105_v62 = vunpack.i.h.bf16 %v2103_v6  ;;  %v2104_v2 = vunpack.i.l.bf16 %v2103_v6 }
 0x393   : > { %v1337_v25 = vsel %vm314_vm0, %v2480_v26, %v2105_v62  ;;  %v1336_v13 = vsel %vm314_vm0, %v2474_v24, %v2104_v2  ;;  %v1646_v24 = vld [vmem:[%s284_s14] ss:$0 sm:$0xff] }
 0x394   : > { %v2108_v51 = vpop.permute.xlu0 %2107 }
 0x395   : > { %v2110_v4 = vunpack.i.h.bf16 %v2108_v51  ;;  %v2109_v34 = vunpack.i.l.bf16 %v2108_v51 }
 0x397   : > { %v1339_v35 = vsel %vm314_vm0, %v2500_v33, %v2110_v4  ;;  %v1338_v26 = vsel %vm314_vm0, %v2495_v32, %v2109_v34 }
 0x398   : > { %v2113_v57 = vpop.permute.xlu0 %2112  ;;  %v2000_v47 = vpack.c.bf16 %v1339_v35, %v1338_v26 }
 0x399   : > { %v2115_v7 = vunpack.i.h.bf16 %v2113_v57  ;;  %v2114_v14 = vunpack.i.l.bf16 %v2113_v57 }
 0x39b   : > { %v1341_v42 = vsel %vm314_vm0, %v2520_v40, %v2115_v7  ;;  %v1340_v48 = vsel %vm314_vm0, %v2516_v39, %v2114_v14 }
 0x39c   : > { %v2118_v38 = vpop.permute.xlu0 %2117  ;;  %v2003_v32 = vpack.c.bf16 %v1341_v42, %v1340_v48 }
 0x39d   : > { %v2120_v33 = vunpack.i.h.bf16 %v2118_v38  ;;  %v2119_v50 = vunpack.i.l.bf16 %v2118_v38 }
 0x39f   : > { %v1343_v55 = vsel %vm314_vm0, %v2540_v46, %v2120_v33  ;;  %v1342_v36 = vsel %vm314_vm0, %v2535_v45, %v2119_v50 }
 0x3a0   : > { %v2123_v21 = vpop.permute.xlu0 %2122  ;;  %v2006_v39 = vpack.c.bf16 %v1343_v55, %v1342_v36 }
 0x3a1   : > { %v2125_v37 = vunpack.i.h.bf16 %v2123_v21  ;;  %v2124_v43 = vunpack.i.l.bf16 %v2123_v21 }
 0x3a3   : > { %v1345_v40 = vsel %vm314_vm0, %v2559_v53, %v2125_v37  ;;  %v1344_v56 = vsel %vm314_vm0, %v2554_v52, %v2124_v43 }
 0x3a4   : > { %v2128_v54 = vpop.permute.xlu0 %2127  ;;  %v2009_v45 = vpack.c.bf16 %v1345_v40, %v1344_v56 }
 0x3a5   : > { %v2130_v3 = vunpack.i.h.bf16 %v2128_v54  ;;  %v2129_v61 = vunpack.i.l.bf16 %v2128_v54 }
 0x3a7   : > { %v1347_v46 = vsel %vm314_vm0, %v2579_v59, %v2130_v3  ;;  %v1346_v63 = vsel %vm314_vm0, %v2574_v58, %v2129_v61 }
 0x3a8   : > { %v2012_v53 = vpack.c.bf16 %v1347_v46, %v1346_v63 }
 0x3e4   : > { %v1253_v27 = vpop.xlane.xlu1 %1252 }
 0x3e5   : > { %v1254_v22 = vsub.f32 %v1251_v18, %v1253_v27 }
 0x3e7   : > { %v1255_v23 = vmul.f32 1.442695, %v1254_v22 }
 0x3e8   : > { %v2098_v60 = vpop.permute.xlu1 %2097 }
 0x3e9   : > { %2195 = vpow2.f32 %v1255_v23  ;;  %v2100_v15 = vunpack.i.h.bf16 %v2098_v60  ;;  %v2099_v9 = vunpack.i.l.bf16 %v2098_v60 }
 0x3eb   : > { %v1335_v10 = vsel %vm314_vm0, %v2459_v17, %v2100_v15  ;;  %v1334_v12 = vsel %vm314_vm0, %v2199_v11, %v2099_v9  ;;  %v1997_v17 = vpack.c.bf16 %v1337_v25, %v1336_v13 }
 0x3ec   : > { %v1994_v20 = vpack.c.bf16 %v1335_v10, %v1334_v12 }
 0x3ee   : > { %1995 = vmatpush3.bf16.msra.mxu1 %v1994_v20 }
 0x3ef   : > { %1996 = vmatprep.subr.bf16.mxu1 %v2296_v1 }
 0x3f2   : > { %1998 = vmatpush3.bf16.msra.mxu1 %v1997_v17 }
 0x3f3   : > { %v2196_v5 = vpop.eup %2195  ;;  %1999 = vmatprep.subr.bf16.mxu1 %v2296_v1 }
 0x3f4   : > { %v1263_v19 = vmul.f32 %v2196_v5, %v1646_v24 }
 0x3f6   : > { %1264 = vadd.xlane.f32.xlu1 %v1263_v19  ;;  %2001 = vmatpush3.bf16.msra.mxu1 %v2000_v47 }
 0x3f7   : > { %2002 = vmatprep.subr.bf16.mxu1 %v2296_v1 }
 0x3fa   : > { %2004 = vmatpush3.bf16.msra.mxu1 %v2003_v32 }
 0x3fb   : > { %2005 = vmatprep.subr.bf16.mxu1 %v2296_v1 }
 0x3fe   : > { %2007 = vmatpush3.bf16.msra.mxu1 %v2006_v39 }
 0x3ff   : > { %2008 = vmatprep.subr.bf16.mxu1 %v2296_v1 }
 0x402   : > { %2010 = vmatpush3.bf16.msra.mxu1 %v2009_v45 }
 0x403   : > { %2011 = vmatprep.subr.bf16.mxu1 %v2296_v1 }
 0x406   : > { %2013 = vmatpush3.bf16.msra.mxu1 %v2012_v53 }
 0x483   : > { %v1265_v52 = vpop.xlane.xlu1 %1264 }
 0x484   : > { %2197 = vrcp.f32 %v1265_v52 }
 0x48e   : > { %v2198_v8 = vpop.eup %2197 }
 0x48f   : > { %v1267_v29 = vmul.f32 %v2198_v8, %v1263_v19 }
 0x491   : > { %1910 = vmatmul.mubr.f32.vlgmr.msra.gmra.mrb[18].mxu1 %v1267_v29 }
 0x564   : > { %v1414_v59 = vpop.f32.mrb[18].mxu1 }
 0x565   : > { %v1425_v58 = vmul.f32 %v1414_v59, %v2846_v41  ;;  %1432 = vrot.lane.b32.xlu0 %v1414_v59, %s2300_s16  ;;  %v1911_v1 = vpop.f32.mrb[19].mxu1 }
 0x567   : > { %1427 = vrot.lane.b32.xlu1 %v1425_v58, %s2301_s17  ;;  %s2206_s17 = scalar_lea.vmem %s2205_s22, 256 }
 0x569   : > { %1420 = vrot.lane.b32.xlu0 %v1414_v59, %s2299_s8  ;;  %s2983_s8 = scalar_lea.hbm %s3043_s5, %s1649_s30 }
 0x5d7   : > { %v1433_v0 = vpop.permute.xlu0 %1432 }
 0x5d8   : > { %v1435_v18 = vmul.f32 %v1433_v0, %v2846_v41 }
 0x5d9   : > { %v1428_v28 = vpop.permute.xlu1 %1427 }
 0x5da   : > { %1437 = vrot.lane.b32.xlu0 %v1435_v18, %s2300_s16  ;;  %s2200_s16 = scalar_lea.vmem %s2985_s9, 128 }
 0x5db   : > { %v1421_v49 = vpop.permute.xlu0 %1420  ;;  %p2201_p13 = scmp.ne.s32.totalorder %s2985_s9, %s2200_s16  ;;  %p2208_p4 = scmp.lt.s32.totalorder %s2206_s17, %s2200_s16 }
 0x5dc   : > { %1424 = vst.msk [vmem:[%s268_s15] sm:$0xff] %vm1423_vm4, %v1421_v49 }
 0x5dd   : > { %1431 = vst.msk [vmem:[%s268_s15] sm:$0xff] %vm1430_vm5, %v1428_v28  ;;  %p2202_p0 = pnand %p2201_p13, %p2384_p3  ;;  %p2209_p5 = por %p2208_p4, %p2207_p2 }
 0x5df   : > { %p2203_p1 = pneg %p2202_p0 }
 0x5e1   : > { %p2210_p6 = pnand %p2209_p5, %p2203_p1 }
 0x64c   : > { %v1438_v41 = vpop.permute.xlu0 %1437 }
 0x64d   : > { %1441 = vst.msk [vmem:[%s268_s15] sm:$0xff] %vm1440_vm6, %v1438_v41 }
 0x64e   : > { %2213 = shalt.err (!%p2210_p6)
}
 0x64f   : > { %s2214_s12 = scalar_lea.hbm %s2983_s8, 128  ;;  %s2218_s27 = scalar_lea.hbm %s3043_s5, 512 }
 0x650   : > { %p2215_p7 = scmp.ne.s32.totalorder %s2983_s8, %s2214_s12  ;;  %p2219_p11 = scmp.lt.u32.totalorder %s2983_s8, %s3043_s5 }
 0x651   : > { %p2220_p12 = scmp.lt.u32.totalorder %s2218_s27, %s2214_s12  ;;  %p2222_p0 = scmp.lt.u32.totalorder %s2214_s12, %s2983_s8 }
 0x652   : > { %p2216_p9 = pnand %p2215_p7, %p2384_p3 }
 0x653   : > { %p2221_p13 = por %p2220_p12, %p2219_p11 }
 0x654   : > { %p2217_p10 = pneg %p2216_p9 }
 0x655   : > { %p2223_p1 = por %p2222_p0, %p2221_p13 }
 0x657   : > { %p2224_p2 = pnand %p2223_p1, %p2217_p10 }
 0x659   : > { %2227 = shalt.err (!%p2224_p2)
}
 0x65a   : > { %2014 = dma.vmem_to_hbm [thread:$0]  (%p2384_p3), %s2985_s9, 128, %s2983_s8, %s1443_s13  }
 0x65b PF: > { %p2020_p4 = scmp.ge.s32.totalorder %s2294_s25, 2  ;;  %s1470_s14 = sand.u32 1, %s2266_s18  }
 0x65c   : > { %s1471_s16 = scalar_lea.sflag [#allocation3], %s1470_s14 }
 0x65d   : > { %p2017_p5 = pnand %p2020_p4, %p2393_p8 }
 0x65f   : > { %2261 = dma.done.wait (!%p2017_p5), %s1471_s16, 128  }
 0x660   : > { %2263 = vsyncadd (!%p2017_p5), %s1471_s16, 4294967168  ;;  %s18_s25 = sadd.s32 1, %s2294_s25   ;;  %s3048_s18 = smov %s2270_s19 }
 0x661   : > { %p15_p6 = scmp.ge.s32.totalorder %s18_s25, 6   ;;  %s3049_s19 = smov %s2274_s20 }
 0x662   : > { %s3050_s20 = smov %s2402_s11  ;;  %s3051_s21 = smov %s2286_s23 }
 0x663   : > { %s3052_s22 = smov %s2290_s24  ;;  %s3053_s23 = smov %s3056_s28 }
 0x664   : > { %s3054_s24 = smov %s3060_s29  ;;  %17 = sbr.rel (!%p15_p6) target bundleno = 5 (0x5), region = 85 }
 0x66b   :  { %1476 = vsyncpa [#allocation3], 1 }
 0x66c   :  { %1478 = vsyncpa [#allocation3 + $0x1], 1 }

</bundles_post_ra>
